<compile_context>
chip_gen: v5e
topology: v5e:2x2
jax: 0.10.0
libtpu: 0.0.40
codegen_flags: <defaults>
</compile_context>

<pallas_src>
import functools

import jax
import jax.numpy as jnp
from jax import lax
from jax.experimental import pallas as pl
from jax.experimental.pallas import tpu as pltpu

BN_EPS = 1e-5
MATMUL_DTYPE = jnp.bfloat16     # MXU operand dtype (accumulation stays f32)
ACT_DTYPE = jnp.bfloat16        # inter-stage activation storage (y1 / y2)
ROW_TILE_TARGET = 512           # rows per grid step, VMEM permitting


def _vmem_limit_bytes():
    """~3/4 of physical VMEM, capped at 96 MiB (=> ~48 MiB on v7x)."""
    try:
        cap = int(pltpu.get_tpu_info().vmem_capacity_bytes)
        return int(min(96 * 1024 * 1024, (cap * 3) // 4))
    except Exception:
        return 32 * 1024 * 1024   # conservative fallback, safe on all parts


VMEM_LIMIT = _vmem_limit_bytes()


def _stage_kernel(scale_ref, shift_ref, prev_ref, cur_ref, nxt_ref, band_ref,
                  y_ref, stats_ref, *, normalize, apply_act, h_img):
    """normalize(+ReLU) the stage input, 3x3 'same' conv, per-lane BN partials.

    scale_ref/shift_ref: (1, W*Cin)    per-lane affine of the *input*
                                       (skipped for stage 1, BN1 for stage 2)
    prev_ref/nxt_ref   : (hb, W*Cin)   hb-row blocks holding the +-1 row halo
    cur_ref            : (th, W*Cin)   current row tile of the (N*H, W*Cin) slab
    band_ref           : (3, W*Cin, W*Cout) banded conv weights (one per dy)
    y_ref              : (th, W*Cout)  raw conv output (pre-BN), lane dense
    stats_ref          : (1, 2, W*Cout) per-tile per-lane (sum, sum_sq)
    """
    i = pl.program_id(0)
    th = cur_ref.shape[0]
    hb = prev_ref.shape[0]

    if normalize:
        scale = scale_ref[...]
        shift = shift_ref[...]

    def norm(r):
        a = r.astype(jnp.float32)
        if normalize:
            a = a * scale + shift
        if apply_act:
            a = jnp.maximum(a, 0.0)
        return a

    mid = norm(cur_ref[...])           # (th, W*Cin) f32
    top = norm(prev_ref[hb - 1:hb, :])  # (1, W*Cin) row directly above the tile
    bot = norm(nxt_ref[0:1, :])         # (1, W*Cin) row directly below the tile

    # Tap operands via aligned sublane rolls (XLU slot) + one-row halo selects.
    # Image edges (batch folded into rows) are zero-masked per row, which also
    # neutralises the clamped/garbage halos of the first / last tile.
    local = lax.broadcasted_iota(jnp.int32, (th, 1), 0)
    gmod = (local + i * th) % h_img                 # global row index mod H

    up = pltpu.roll(mid, 1, 0)                      # up[r]   = mid[r-1]
    up = jnp.where(local == 0, top, up)             # tile-boundary halo row
    up = jnp.where(gmod == 0, 0.0, up)              # image top edge -> zero pad

    down = pltpu.roll(mid, th - 1, 0)               # down[r] = mid[r+1] (shift -1)
    down = jnp.where(local == th - 1, bot, down)
    down = jnp.where(gmod == h_img - 1, 0.0, down)  # image bottom edge -> zero

    acc = jnp.dot(up.astype(MATMUL_DTYPE), band_ref[0],
                  preferred_element_type=jnp.float32)
    acc = acc + jnp.dot(mid.astype(MATMUL_DTYPE), band_ref[1],
                        preferred_element_type=jnp.float32)
    acc = acc + jnp.dot(down.astype(MATMUL_DTYPE), band_ref[2],
                        preferred_element_type=jnp.float32)

    y_ref[...] = acc.astype(y_ref.dtype)

    # Per-lane BN partials from the f32 accumulator; lane-dense (2, W*Cout)
    # block => unmasked stores.  Lane->channel fold happens in the wrapper.
    psum = jnp.sum(acc, axis=0, keepdims=True)
    psq = jnp.sum(acc * acc, axis=0, keepdims=True)
    stats_ref[...] = jnp.concatenate([psum, psq], axis=0)[None]


def _bn_relu_kernel(scale_ref, shift_ref, y_ref, o_ref):
    y = y_ref[...].astype(jnp.float32)
    o_ref[...] = jnp.maximum(y * scale_ref[...] + shift_ref[...], 0.0)


def _make_band(w_hwio, w_img):
    """(3,3,Cin,Cout) HWIO weights -> (3, W*Cin, W*Cout) block-banded weights.

    band[dy, p*Cin+ci, w*Cout+co] = w[dy, dx, ci, co] where p = w + dx - 1,
    with out-of-range p simply absent (== SAME zero padding along W).
    """
    kh, kw, c_in, c_out = w_hwio.shape
    p = jnp.arange(w_img)[:, None]
    wcol = jnp.arange(w_img)[None, :]
    band5 = jnp.zeros((kh, w_img, c_in, w_img, c_out), jnp.float32)
    for dx in range(kw):
        ind = (p == wcol + dx - 1).astype(jnp.float32)          # (W, W)
        band5 = band5 + jnp.einsum('dio,pw->dpiwo',
                                   w_hwio[:, dx].astype(jnp.float32), ind)
    return band5.reshape(kh, w_img * c_in, w_img * c_out)


def _finalize_bn(stats, gamma, beta, count, w_img, c):
    """Per-tile per-lane (sum, sum_sq) -> per-lane BN scale/shift, in f32.

    One-pass var = E[x^2] - E[x]^2 (biased, like PyTorch training mode).
    """
    s = jnp.sum(stats, axis=0)                       # (2, W*C) over row tiles
    s = s.reshape(2, w_img, c).sum(axis=1)           # (2, C)  lane -> channel
    mean = s[0] / count
    var = jnp.maximum(s[1] / count - mean * mean, 0.0)
    inv = lax.rsqrt(var + BN_EPS)
    g = gamma.reshape(-1).astype(jnp.float32)
    b = beta.reshape(-1).astype(jnp.float32)
    scale_c = g * inv
    shift_c = b - mean * scale_c
    scale = jnp.tile(scale_c, w_img)[None, :]        # (1, W*C), lane = w*C + c
    shift = jnp.tile(shift_c, w_img)[None, :]
    return scale, shift


def _pick_row_tile(rows, l_in, l_out, vmem_limit, unit):
    """Largest multiple-of-`unit` divisor of rows <= ROW_TILE_TARGET that keeps
    the double-buffered tile working set well inside the VMEM limit."""
    per_row = (2 * l_in + 2 * l_out + 4 * max(l_in, l_out)) * 4
    cap = max(unit, int((vmem_limit // 3) // per_row))
    t = max(unit, min(rows, ROW_TILE_TARGET, cap))
    t -= t % unit
    while rows % t:
        t -= unit
    return t


def _conv_stage(x_flat, band, scale, shift, *, normalize, apply_act, h_img,
                th, hb, out_dtype):
    """One conv stage: in-kernel input normalize(+ReLU) -> 3x3 conv -> stats."""
    rows, l_in = x_flat.shape
    l_out = band.shape[-1]
    n_t = rows // th
    nbh = th // hb
    n_blkh = rows // hb

    kernel = functools.partial(_stage_kernel, normalize=normalize,
                               apply_act=apply_act, h_img=h_img)
    flops = int(2 * rows * 3 * l_in * l_out)
    bytes_acc = int(x_flat.size * x_flat.dtype.itemsize
                    + band.size * band.dtype.itemsize
                    + rows * l_out * jnp.dtype(out_dtype).itemsize)

    y, stats = pl.pallas_call(
        kernel,
        out_shape=(jax.ShapeDtypeStruct((rows, l_out), out_dtype),
                   jax.ShapeDtypeStruct((n_t, 2, l_out), jnp.float32)),
        grid=(n_t,),
        in_specs=[
            pl.BlockSpec((1, l_in), lambda i: (0, 0)),              # scale
            pl.BlockSpec((1, l_in), lambda i: (0, 0)),              # shift
            pl.BlockSpec((hb, l_in),                                # halo above
                         lambda i: (jnp.maximum(i * nbh - 1, 0), 0)),
            pl.BlockSpec((th, l_in), lambda i: (i, 0)),             # row tile
            pl.BlockSpec((hb, l_in),                                # halo below
                         lambda i: (jnp.minimum((i + 1) * nbh, n_blkh - 1), 0)),
            # Banded weights: constant index map -> resident in VMEM.
            # TODO(synk): tile the band along l_out / single-buffer it once
            # W*C grows (band is O(W^2*Cin*Cout)) to stay inside v7x's 64 MiB.
            pl.BlockSpec((3, l_in, l_out), lambda i: (0, 0, 0)),
        ],
        out_specs=(pl.BlockSpec((th, l_out), lambda i: (i, 0)),
                   pl.BlockSpec((1, 2, l_out), lambda i: (i, 0, 0))),
        compiler_params=pltpu.CompilerParams(
            dimension_semantics=("parallel",),   # megacore-shardable on v7x
            vmem_limit_bytes=VMEM_LIMIT),
        cost_estimate=pl.CostEstimate(flops=flops, transcendentals=0,
                                      bytes_accessed=bytes_acc),
    )(scale, shift, x_flat, x_flat, x_flat, band)
    return y, stats


def _bn_relu(y_flat, scale, shift, *, th):
    rows, l = y_flat.shape
    n_t = rows // th
    return pl.pallas_call(
        _bn_relu_kernel,
        out_shape=jax.ShapeDtypeStruct((rows, l), jnp.float32),
        grid=(n_t,),
        in_specs=[pl.BlockSpec((1, l), lambda i: (0, 0)),
                  pl.BlockSpec((1, l), lambda i: (0, 0)),
                  pl.BlockSpec((th, l), lambda i: (i, 0))],
        out_specs=pl.BlockSpec((th, l), lambda i: (i, 0)),
        compiler_params=pltpu.CompilerParams(
            dimension_semantics=("parallel",),
            vmem_limit_bytes=VMEM_LIMIT),
    )(scale, shift, y_flat)


def unet_down(x_nchw, w1_hwio, w2_hwio, gamma, beta):
    """UnetDown forward. x_nchw: (N, Cin, H, W) as in PyTorch.

    Conv weights are HWIO (PyTorch OIHW converts via w.permute(2, 3, 1, 0)).
    BatchNorm runs in training mode (batch statistics, biased variance), with
    the same affine (gamma, beta) shared by both BN applications.
    """
    # TODO(synk): BatchNorm running_mean/running_var buffer updates (training
    # side effect) are not modeled; they do not affect the forward output.
    n, c_in, h, w_img = x_nchw.shape
    c1 = w1_hwio.shape[-1]
    c2 = w2_hwio.shape[-1]
    rows = n * h
    assert rows % 8 == 0, "N*H must be a multiple of 8"

    # NCHW -> NHWC, fold batch into the row axis, flatten (W, C) onto lanes.
    # TODO(synk): fuse the NCHW<->NHWC relayouts into the kernels; kept as
    # single XLA passes since the in-kernel version needs a cross-lane
    # einshape and a sub-128-lane output block at these widths.
    x = jnp.transpose(x_nchw, (0, 2, 3, 1)).reshape(rows, w_img * c_in)

    band1 = _make_band(w1_hwio, w_img).astype(MATMUL_DTYPE)
    band2 = _make_band(w2_hwio, w_img).astype(MATMUL_DTYPE)

    if rows % 16 == 0:
        act_dtype, hb = ACT_DTYPE, 16     # bf16 activations, (16,128)-native tiles
    else:
        act_dtype, hb = jnp.float32, 8    # fallback keeps 8-row blocks legal

    l_in_max = w_img * max(c_in, c1)
    l_out_max = w_img * max(c1, c2)
    th = _pick_row_tile(rows, l_in_max, l_out_max, VMEM_LIMIT, hb)

    dummy = jnp.zeros((1, w_img * c_in), jnp.float32)
    count = float(n * h * w_img)

    # stage 1: conv1 + per-tile batch-norm partial stats (identity input
    # affine is statically skipped in-kernel).
    y1, st1 = _conv_stage(x, band1, dummy, dummy, normalize=False,
                          apply_act=False, h_img=h, th=th, hb=hb,
                          out_dtype=act_dtype)
    scale1, shift1 = _finalize_bn(st1, gamma, beta, count, w_img, c1)

    # stage 2: bn1 + relu fused with conv2 + partial stats.
    y2, st2 = _conv_stage(y1, band2, scale1, shift1, normalize=True,
                          apply_act=True, h_img=h, th=th, hb=hb,
                          out_dtype=act_dtype)
    scale2, shift2 = _finalize_bn(st2, gamma, beta, count, w_img, c2)

    # final bn2 + relu (stats only known after all of stage 2).
    out = _bn_relu(y2, scale2, shift2, th=th)
    return out.reshape(n, h, w_img, c2).transpose(0, 3, 1, 2)


# ------------------------- pure-JAX reference -------------------------------
def _ref_stage(x_nhwc, w_hwio, gamma, beta):
    y = lax.conv_general_dilated(
        x_nhwc, w_hwio, window_strides=(1, 1), padding="SAME",
        dimension_numbers=("NHWC", "HWIO", "NHWC"))
    mean = jnp.mean(y, axis=(0, 1, 2), keepdims=True)
    var = jnp.mean((y - mean) ** 2, axis=(0, 1, 2), keepdims=True)
    y = (y - mean) * lax.rsqrt(var + BN_EPS)
    y = y * gamma.reshape(1, 1, 1, -1) + beta.reshape(1, 1, 1, -1)
    return jnp.maximum(y, 0.0)


def _ref_unet_down(x_nchw, w1, w2, gamma, beta):
    x = jnp.transpose(x_nchw, (0, 2, 3, 1))
    out = _ref_stage(x, w1, gamma, beta)
    out = _ref_stage(out, w2, gamma, beta)
    return jnp.transpose(out, (0, 3, 1, 2))


if __name__ == "__main__":
    key = jax.random.PRNGKey(0)
    kx, k1, k2, kg, kb = jax.random.split(key, 5)

    N, in_channels, H, W = 2, 4, 16, 16
    features = 8

    x = jax.random.normal(kx, (N, in_channels, H, W), dtype=jnp.float32)
    # Conv2d has bias=False; BN affine params are shared by both applications.
    w1 = 0.1 * jax.random.normal(k1, (3, 3, in_channels, features), jnp.float32)
    w2 = 0.1 * jax.random.normal(k2, (3, 3, features, features), jnp.float32)
    gamma = 1.0 + 0.1 * jax.random.normal(kg, (features,), jnp.float32)
    beta = 0.1 * jax.random.normal(kb, (features,), jnp.float32)

    fwd = jax.jit(unet_down)
    out = jax.block_until_ready(fwd(x, w1, w2, gamma, beta))

    ref = jax.block_until_ready(_ref_unet_down(x, w1, w2, gamma, beta))
    assert out.shape == (N, features, H, W)
    err = float(jnp.max(jnp.abs(out - ref)))
    # bf16 MXU operands + bf16 inter-stage activations -> looser tolerance
    # than the all-f32 path.
    assert err < 5e-2, f"mismatch vs pure-JAX reference: max abs err = {err}"

    print("KERNEL_OK")
</pallas_src>

<mosaic_0001>
module attributes {stable_mosaic.version = 11 : i64} {
  func.func @_stage_kernel(%arg0: i32, %arg1: memref<1x64xf32, #tpu.memory_space<vmem>>, %arg2: memref<1x64xf32, #tpu.memory_space<vmem>>, %arg3: memref<16x64xf32, #tpu.memory_space<vmem>>, %arg4: memref<32x64xf32, #tpu.memory_space<vmem>>, %arg5: memref<16x64xf32, #tpu.memory_space<vmem>>, %arg6: memref<3x64x128xbf16, #tpu.memory_space<vmem>>, %arg7: memref<32x128xbf16, #tpu.memory_space<vmem>>, %arg8: memref<1x2x128xf32, #tpu.memory_space<vmem>>) attributes {dimension_semantics = [#tpu.dimension_semantics<parallel>], iteration_bounds = array<i64: 1>, scalar_prefetch = 0 : i64, scratch_operands = 0 : i64, tpu.core_type = #tpu.core_type<tc>, window_params = [{pipeline_mode = #tpu.pipeline_mode<synchronous>, transform_indices = @transform_0, window_bounds = array<i64: 1, 64>}, {pipeline_mode = #tpu.pipeline_mode<synchronous>, transform_indices = @transform_1, window_bounds = array<i64: 1, 64>}, {transform_indices = @transform_2, window_bounds = array<i64: 16, 64>}, {transform_indices = @transform_3, window_bounds = array<i64: 32, 64>}, {transform_indices = @transform_4, window_bounds = array<i64: 16, 64>}, {pipeline_mode = #tpu.pipeline_mode<synchronous>, transform_indices = @transform_5, window_bounds = array<i64: 3, 64, 128>}, {transform_indices = @transform_6, window_bounds = array<i64: 32, 128>}, {transform_indices = @transform_7, window_bounds = array<i64: 1, 2, 128>}]} {
    %c0 = arith.constant 0 : index
    %c0_0 = arith.constant 0 : index
    %0 = vector.load %arg4[%c0, %c0_0] : memref<32x64xf32, #tpu.memory_space<vmem>>, vector<32x64xf32>
    %c15 = arith.constant 15 : index
    %c0_1 = arith.constant 0 : index
    %1 = vector.load %arg3[%c15, %c0_1] : memref<16x64xf32, #tpu.memory_space<vmem>>, vector<1x64xf32>
    %c0_2 = arith.constant 0 : index
    %c0_3 = arith.constant 0 : index
    %2 = vector.load %arg5[%c0_2, %c0_3] : memref<16x64xf32, #tpu.memory_space<vmem>>, vector<1x64xf32>
    %3 = tpu.iota {dimensions = array<i32: 0>} : vector<32x1xi32>
    %c32_i32 = arith.constant 32 : i32
    %4 = arith.muli %arg0, %c32_i32 : i32
    %5 = vector.broadcast %4 : i32 to vector<32x1xi32>
    %6 = arith.addi %3, %5 : vector<32x1xi32>
    %c16_i32 = arith.constant 16 : i32
    %c0_i32 = arith.constant 0 : i32
    %7 = arith.cmpi eq, %c16_i32, %c0_i32 : i32
    %c1_i32 = arith.constant 1 : i32
    %8 = arith.select %7, %c1_i32, %c16_i32 : i32
    %9 = vector.broadcast %8 : i32 to vector<32x1xi32>
    %10 = arith.remsi %6, %9 : vector<32x1xi32>
    %c0_i32_4 = arith.constant 0 : i32
    %11 = vector.broadcast %c0_i32_4 : i32 to vector<32x1xi32>
    %12 = arith.cmpi ne, %10, %11 : vector<32x1xi32>
    %c0_i32_5 = arith.constant 0 : i32
    %13 = vector.broadcast %c0_i32_5 : i32 to vector<32x1xi32>
    %14 = arith.cmpi slt, %10, %13 : vector<32x1xi32>
    %c0_i32_6 = arith.constant 0 : i32
    %15 = arith.cmpi slt, %8, %c0_i32_6 : i32
    %16 = vector.broadcast %15 : i1 to vector<32x1xi1>
    %17 = vector.broadcast %16 : vector<32x1xi1> to vector<32x1xi1>
    %18 = arith.xori %14, %17 : vector<32x1xi1>
    %19 = arith.andi %18, %12 : vector<32x1xi1>
    %20 = vector.broadcast %8 : i32 to vector<32x1xi32>
    %21 = arith.addi %10, %20 : vector<32x1xi32>
    %22 = arith.select %19, %21, %10 : vector<32x1xi1>, vector<32x1xi32>
    %c1_i32_7 = arith.constant 1 : i32
    %23 = tpu.dynamic_rotate %0 by %c1_i32_7 dim 0 : vector<32x64xf32>, i32 -> vector<32x64xf32>
    %c0_i32_8 = arith.constant 0 : i32
    %24 = vector.broadcast %c0_i32_8 : i32 to vector<32x1xi32>
    %25 = arith.cmpi eq, %3, %24 : vector<32x1xi32>
    %26 = vector.shape_cast %25 : vector<32x1xi1> to vector<32x1xi1>
    %27 = vector.broadcast %26 : vector<32x1xi1> to vector<32x64xi1>
    %28 = vector.shape_cast %1 : vector<1x64xf32> to vector<1x64xf32>
    %29 = vector.broadcast %28 : vector<1x64xf32> to vector<32x64xf32>
    %30 = arith.select %27, %29, %23 : vector<32x64xi1>, vector<32x64xf32>
    %c0_i32_9 = arith.constant 0 : i32
    %31 = vector.broadcast %c0_i32_9 : i32 to vector<32x1xi32>
    %32 = arith.cmpi eq, %22, %31 : vector<32x1xi32>
    %cst = arith.constant 0.000000e+00 : f32
    %33 = vector.shape_cast %32 : vector<32x1xi1> to vector<32x1xi1>
    %34 = vector.broadcast %33 : vector<32x1xi1> to vector<32x64xi1>
    %35 = vector.broadcast %cst : f32 to vector<32x64xf32>
    %36 = arith.select %34, %35, %30 : vector<32x64xi1>, vector<32x64xf32>
    %c31_i32 = arith.constant 31 : i32
    %37 = tpu.dynamic_rotate %0 by %c31_i32 dim 0 : vector<32x64xf32>, i32 -> vector<32x64xf32>
    %c31_i32_10 = arith.constant 31 : i32
    %38 = vector.broadcast %c31_i32_10 : i32 to vector<32x1xi32>
    %39 = arith.cmpi eq, %3, %38 : vector<32x1xi32>
    %40 = vector.shape_cast %39 : vector<32x1xi1> to vector<32x1xi1>
    %41 = vector.broadcast %40 : vector<32x1xi1> to vector<32x64xi1>
    %42 = vector.shape_cast %2 : vector<1x64xf32> to vector<1x64xf32>
    %43 = vector.broadcast %42 : vector<1x64xf32> to vector<32x64xf32>
    %44 = arith.select %41, %43, %37 : vector<32x64xi1>, vector<32x64xf32>
    %c15_i32 = arith.constant 15 : i32
    %45 = vector.broadcast %c15_i32 : i32 to vector<32x1xi32>
    %46 = arith.cmpi eq, %22, %45 : vector<32x1xi32>
    %cst_11 = arith.constant 0.000000e+00 : f32
    %47 = vector.shape_cast %46 : vector<32x1xi1> to vector<32x1xi1>
    %48 = vector.broadcast %47 : vector<32x1xi1> to vector<32x64xi1>
    %49 = vector.broadcast %cst_11 : f32 to vector<32x64xf32>
    %50 = arith.select %48, %49, %44 : vector<32x64xi1>, vector<32x64xf32>
    %51 = arith.truncf %36 : vector<32x64xf32> to vector<32x64xbf16>
    %c0_12 = arith.constant 0 : index
    %c0_13 = arith.constant 0 : index
    %c0_14 = arith.constant 0 : index
    %52 = vector.load %arg6[%c0_12, %c0_13, %c0_14] : memref<3x64x128xbf16, #tpu.memory_space<vmem>>, vector<1x64x128xbf16>
    %53 = vector.shape_cast %52 : vector<1x64x128xbf16> to vector<64x128xbf16>
    %cst_15 = arith.constant dense<0.000000e+00> : vector<32x128xf32>
    %54 = tpu.matmul %51, %53, %cst_15 {dimension_numbers = #tpu.dot_dimension_numbers<[1], [0], [0], [1], [0, 0, 1, 1], [], []>} : vector<32x64xbf16>, vector<64x128xbf16>, vector<32x128xf32> -> vector<32x128xf32>
    %55 = arith.truncf %0 : vector<32x64xf32> to vector<32x64xbf16>
    %c1 = arith.constant 1 : index
    %c0_16 = arith.constant 0 : index
    %c0_17 = arith.constant 0 : index
    %56 = vector.load %arg6[%c1, %c0_16, %c0_17] : memref<3x64x128xbf16, #tpu.memory_space<vmem>>, vector<1x64x128xbf16>
    %57 = vector.shape_cast %56 : vector<1x64x128xbf16> to vector<64x128xbf16>
    %cst_18 = arith.constant dense<0.000000e+00> : vector<32x128xf32>
    %58 = tpu.matmul %55, %57, %cst_18 {dimension_numbers = #tpu.dot_dimension_numbers<[1], [0], [0], [1], [0, 0, 1, 1], [], []>} : vector<32x64xbf16>, vector<64x128xbf16>, vector<32x128xf32> -> vector<32x128xf32>
    %59 = arith.addf %54, %58 : vector<32x128xf32>
    %60 = arith.truncf %50 : vector<32x64xf32> to vector<32x64xbf16>
    %c2 = arith.constant 2 : index
    %c0_19 = arith.constant 0 : index
    %c0_20 = arith.constant 0 : index
    %61 = vector.load %arg6[%c2, %c0_19, %c0_20] : memref<3x64x128xbf16, #tpu.memory_space<vmem>>, vector<1x64x128xbf16>
    %62 = vector.shape_cast %61 : vector<1x64x128xbf16> to vector<64x128xbf16>
    %cst_21 = arith.constant dense<0.000000e+00> : vector<32x128xf32>
    %63 = tpu.matmul %60, %62, %cst_21 {dimension_numbers = #tpu.dot_dimension_numbers<[1], [0], [0], [1], [0, 0, 1, 1], [], []>} : vector<32x64xbf16>, vector<64x128xbf16>, vector<32x128xf32> -> vector<32x128xf32>
    %64 = arith.addf %59, %63 : vector<32x128xf32>
    %65 = arith.truncf %64 : vector<32x128xf32> to vector<32x128xbf16>
    %c0_22 = arith.constant 0 : index
    %c0_23 = arith.constant 0 : index
    %66 = vector.load %arg7[%c0_22, %c0_23] : memref<32x128xbf16, #tpu.memory_space<vmem>>, vector<32x128xbf16>
    tpu.vector_store %arg7[%c0_22, %c0_23], %65 {strides = array<i32>} : memref<32x128xbf16, #tpu.memory_space<vmem>>, vector<32x128xbf16>,
    %cst_24 = arith.constant dense<0.000000e+00> : vector<128xf32>
    %67 = vector.multi_reduction <add>, %64, %cst_24 [0] : vector<32x128xf32> to vector<128xf32>
    %68 = vector.shape_cast %67 : vector<128xf32> to vector<1x128xf32>
    %69 = arith.mulf %64, %64 : vector<32x128xf32>
    %cst_25 = arith.constant dense<0.000000e+00> : vector<128xf32>
    %70 = vector.multi_reduction <add>, %69, %cst_25 [0] : vector<32x128xf32> to vector<128xf32>
    %71 = vector.shape_cast %70 : vector<128xf32> to vector<1x128xf32>
    %72 = tpu.concatenate %68, %71 in 0 : vector<1x128xf32>, vector<1x128xf32> -> vector<2x128xf32>
    %73 = vector.shape_cast %72 : vector<2x128xf32> to vector<1x2x128xf32>
    %c0_26 = arith.constant 0 : index
    %c0_27 = arith.constant 0 : index
    %c0_28 = arith.constant 0 : index
    %74 = vector.load %arg8[%c0_26, %c0_27, %c0_28] : memref<1x2x128xf32, #tpu.memory_space<vmem>>, vector<1x2x128xf32>
    tpu.vector_store %arg8[%c0_26, %c0_27, %c0_28], %73 {strides = array<i32>} : memref<1x2x128xf32, #tpu.memory_space<vmem>>, vector<1x2x128xf32>,
    return
  }
  func.func @transform_0(%arg0: i32) -> (i32, i32) {
    %c0_i32 = arith.constant 0 : i32
    %c0_i32_0 = arith.constant 0 : i32
    %c0_i32_1 = arith.constant 0 : i32
    return %c0_i32, %c0_i32_0 : i32, i32
  }
  func.func @transform_1(%arg0: i32) -> (i32, i32) {
    %c0_i32 = arith.constant 0 : i32
    %c0_i32_0 = arith.constant 0 : i32
    %c0_i32_1 = arith.constant 0 : i32
    return %c0_i32, %c0_i32_0 : i32, i32
  }
  func.func @transform_2(%arg0: i32) -> (i32, i32) {
    %c2_i32 = arith.constant 2 : i32
    %0 = arith.muli %arg0, %c2_i32 : i32
    %c1_i32 = arith.constant 1 : i32
    %1 = arith.subi %0, %c1_i32 : i32
    %c0_i32 = arith.constant 0 : i32
    %2 = arith.maxsi %1, %c0_i32 : i32
    %c0_i32_0 = arith.constant 0 : i32
    %c0_i32_1 = arith.constant 0 : i32
    return %2, %c0_i32_0 : i32, i32
  }
  func.func @transform_3(%arg0: i32) -> (i32, i32) {
    %c0_i32 = arith.constant 0 : i32
    %c0_i32_0 = arith.constant 0 : i32
    return %arg0, %c0_i32 : i32, i32
  }
  func.func @transform_4(%arg0: i32) -> (i32, i32) {
    %c1_i32 = arith.constant 1 : i32
    %0 = arith.addi %arg0, %c1_i32 : i32
    %c2_i32 = arith.constant 2 : i32
    %1 = arith.muli %0, %c2_i32 : i32
    %c1_i32_0 = arith.constant 1 : i32
    %2 = arith.minsi %1, %c1_i32_0 : i32
    %c0_i32 = arith.constant 0 : i32
    %c0_i32_1 = arith.constant 0 : i32
    return %2, %c0_i32 : i32, i32
  }
  func.func @transform_5(%arg0: i32) -> (i32, i32, i32) {
    %c0_i32 = arith.constant 0 : i32
    %c0_i32_0 = arith.constant 0 : i32
    %c0_i32_1 = arith.constant 0 : i32
    %c0_i32_2 = arith.constant 0 : i32
    return %c0_i32, %c0_i32_0, %c0_i32_1 : i32, i32, i32
  }
  func.func @transform_6(%arg0: i32) -> (i32, i32) {
    %c0_i32 = arith.constant 0 : i32
    %c0_i32_0 = arith.constant 0 : i32
    return %arg0, %c0_i32 : i32, i32
  }
  func.func @transform_7(%arg0: i32) -> (i32, i32, i32) {
    %c0_i32 = arith.constant 0 : i32
    %c0_i32_0 = arith.constant 0 : i32
    %c0_i32_1 = arith.constant 0 : i32
    return %arg0, %c0_i32, %c0_i32_0 : i32, i32, i32
  }
}

module attributes {stable_mosaic.version = 11 : i64} {
  func.func @_stage_kernel(%arg0: i32, %arg1: memref<1x128xf32, #tpu.memory_space<vmem>>, %arg2: memref<1x128xf32, #tpu.memory_space<vmem>>, %arg3: memref<16x128xbf16, #tpu.memory_space<vmem>>, %arg4: memref<32x128xbf16, #tpu.memory_space<vmem>>, %arg5: memref<16x128xbf16, #tpu.memory_space<vmem>>, %arg6: memref<3x128x128xbf16, #tpu.memory_space<vmem>>, %arg7: memref<32x128xbf16, #tpu.memory_space<vmem>>, %arg8: memref<1x2x128xf32, #tpu.memory_space<vmem>>) attributes {dimension_semantics = [#tpu.dimension_semantics<parallel>], iteration_bounds = array<i64: 1>, scalar_prefetch = 0 : i64, scratch_operands = 0 : i64, tpu.core_type = #tpu.core_type<tc>, window_params = [{pipeline_mode = #tpu.pipeline_mode<synchronous>, transform_indices = @transform_0, window_bounds = array<i64: 1, 128>}, {pipeline_mode = #tpu.pipeline_mode<synchronous>, transform_indices = @transform_1, window_bounds = array<i64: 1, 128>}, {transform_indices = @transform_2, window_bounds = array<i64: 16, 128>}, {transform_indices = @transform_3, window_bounds = array<i64: 32, 128>}, {transform_indices = @transform_4, window_bounds = array<i64: 16, 128>}, {pipeline_mode = #tpu.pipeline_mode<synchronous>, transform_indices = @transform_5, window_bounds = array<i64: 3, 128, 128>}, {transform_indices = @transform_6, window_bounds = array<i64: 32, 128>}, {transform_indices = @transform_7, window_bounds = array<i64: 1, 2, 128>}]} {
    %c0 = arith.constant 0 : index
    %c0_0 = arith.constant 0 : index
    %0 = vector.load %arg1[%c0, %c0_0] : memref<1x128xf32, #tpu.memory_space<vmem>>, vector<1x128xf32>
    %c0_1 = arith.constant 0 : index
    %c0_2 = arith.constant 0 : index
    %1 = vector.load %arg2[%c0_1, %c0_2] : memref<1x128xf32, #tpu.memory_space<vmem>>, vector<1x128xf32>
    %c0_3 = arith.constant 0 : index
    %c0_4 = arith.constant 0 : index
    %2 = vector.load %arg4[%c0_3, %c0_4] : memref<32x128xbf16, #tpu.memory_space<vmem>>, vector<32x128xbf16>
    %3 = arith.extf %2 : vector<32x128xbf16> to vector<32x128xf32>
    %4 = vector.broadcast %0 : vector<1x128xf32> to vector<32x128xf32>
    %5 = arith.mulf %3, %4 : vector<32x128xf32>
    %6 = vector.broadcast %1 : vector<1x128xf32> to vector<32x128xf32>
    %7 = arith.addf %5, %6 : vector<32x128xf32>
    %cst = arith.constant 0.000000e+00 : f32
    %8 = vector.broadcast %cst : f32 to vector<32x128xf32>
    %9 = arith.maximumf %7, %8 : vector<32x128xf32>
    %c15 = arith.constant 15 : index
    %c0_5 = arith.constant 0 : index
    %10 = vector.load %arg3[%c15, %c0_5] : memref<16x128xbf16, #tpu.memory_space<vmem>>, vector<1x128xbf16>
    %11 = arith.extf %10 : vector<1x128xbf16> to vector<1x128xf32>
    %12 = arith.mulf %11, %0 : vector<1x128xf32>
    %13 = arith.addf %12, %1 : vector<1x128xf32>
    %cst_6 = arith.constant 0.000000e+00 : f32
    %14 = vector.broadcast %cst_6 : f32 to vector<1x128xf32>
    %15 = arith.maximumf %13, %14 : vector<1x128xf32>
    %c0_7 = arith.constant 0 : index
    %c0_8 = arith.constant 0 : index
    %16 = vector.load %arg5[%c0_7, %c0_8] : memref<16x128xbf16, #tpu.memory_space<vmem>>, vector<1x128xbf16>
    %17 = arith.extf %16 : vector<1x128xbf16> to vector<1x128xf32>
    %18 = arith.mulf %17, %0 : vector<1x128xf32>
    %19 = arith.addf %18, %1 : vector<1x128xf32>
    %cst_9 = arith.constant 0.000000e+00 : f32
    %20 = vector.broadcast %cst_9 : f32 to vector<1x128xf32>
    %21 = arith.maximumf %19, %20 : vector<1x128xf32>
    %22 = tpu.iota {dimensions = array<i32: 0>} : vector<32x1xi32>
    %c32_i32 = arith.constant 32 : i32
    %23 = arith.muli %arg0, %c32_i32 : i32
    %24 = vector.broadcast %23 : i32 to vector<32x1xi32>
    %25 = arith.addi %22, %24 : vector<32x1xi32>
    %c16_i32 = arith.constant 16 : i32
    %c0_i32 = arith.constant 0 : i32
    %26 = arith.cmpi eq, %c16_i32, %c0_i32 : i32
    %c1_i32 = arith.constant 1 : i32
    %27 = arith.select %26, %c1_i32, %c16_i32 : i32
    %28 = vector.broadcast %27 : i32 to vector<32x1xi32>
    %29 = arith.remsi %25, %28 : vector<32x1xi32>
    %c0_i32_10 = arith.constant 0 : i32
    %30 = vector.broadcast %c0_i32_10 : i32 to vector<32x1xi32>
    %31 = arith.cmpi ne, %29, %30 : vector<32x1xi32>
    %c0_i32_11 = arith.constant 0 : i32
    %32 = vector.broadcast %c0_i32_11 : i32 to vector<32x1xi32>
    %33 = arith.cmpi slt, %29, %32 : vector<32x1xi32>
    %c0_i32_12 = arith.constant 0 : i32
    %34 = arith.cmpi slt, %27, %c0_i32_12 : i32
    %35 = vector.broadcast %34 : i1 to vector<32x1xi1>
    %36 = vector.broadcast %35 : vector<32x1xi1> to vector<32x1xi1>
    %37 = arith.xori %33, %36 : vector<32x1xi1>
    %38 = arith.andi %37, %31 : vector<32x1xi1>
    %39 = vector.broadcast %27 : i32 to vector<32x1xi32>
    %40 = arith.addi %29, %39 : vector<32x1xi32>
    %41 = arith.select %38, %40, %29 : vector<32x1xi1>, vector<32x1xi32>
    %c1_i32_13 = arith.constant 1 : i32
    %42 = tpu.dynamic_rotate %9 by %c1_i32_13 dim 0 : vector<32x128xf32>, i32 -> vector<32x128xf32>
    %c0_i32_14 = arith.constant 0 : i32
    %43 = vector.broadcast %c0_i32_14 : i32 to vector<32x1xi32>
    %44 = arith.cmpi eq, %22, %43 : vector<32x1xi32>
    %45 = vector.shape_cast %44 : vector<32x1xi1> to vector<32x1xi1>
    %46 = vector.broadcast %45 : vector<32x1xi1> to vector<32x128xi1>
    %47 = vector.shape_cast %15 : vector<1x128xf32> to vector<1x128xf32>
    %48 = vector.broadcast %47 : vector<1x128xf32> to vector<32x128xf32>
    %49 = arith.select %46, %48, %42 : vector<32x128xi1>, vector<32x128xf32>
    %c0_i32_15 = arith.constant 0 : i32
    %50 = vector.broadcast %c0_i32_15 : i32 to vector<32x1xi32>
    %51 = arith.cmpi eq, %41, %50 : vector<32x1xi32>
    %cst_16 = arith.constant 0.000000e+00 : f32
    %52 = vector.shape_cast %51 : vector<32x1xi1> to vector<32x1xi1>
    %53 = vector.broadcast %52 : vector<32x1xi1> to vector<32x128xi1>
    %54 = vector.broadcast %cst_16 : f32 to vector<32x128xf32>
    %55 = arith.select %53, %54, %49 : vector<32x128xi1>, vector<32x128xf32>
    %c31_i32 = arith.constant 31 : i32
    %56 = tpu.dynamic_rotate %9 by %c31_i32 dim 0 : vector<32x128xf32>, i32 -> vector<32x128xf32>
    %c31_i32_17 = arith.constant 31 : i32
    %57 = vector.broadcast %c31_i32_17 : i32 to vector<32x1xi32>
    %58 = arith.cmpi eq, %22, %57 : vector<32x1xi32>
    %59 = vector.shape_cast %58 : vector<32x1xi1> to vector<32x1xi1>
    %60 = vector.broadcast %59 : vector<32x1xi1> to vector<32x128xi1>
    %61 = vector.shape_cast %21 : vector<1x128xf32> to vector<1x128xf32>
    %62 = vector.broadcast %61 : vector<1x128xf32> to vector<32x128xf32>
    %63 = arith.select %60, %62, %56 : vector<32x128xi1>, vector<32x128xf32>
    %c15_i32 = arith.constant 15 : i32
    %64 = vector.broadcast %c15_i32 : i32 to vector<32x1xi32>
    %65 = arith.cmpi eq, %41, %64 : vector<32x1xi32>
    %cst_18 = arith.constant 0.000000e+00 : f32
    %66 = vector.shape_cast %65 : vector<32x1xi1> to vector<32x1xi1>
    %67 = vector.broadcast %66 : vector<32x1xi1> to vector<32x128xi1>
    %68 = vector.broadcast %cst_18 : f32 to vector<32x128xf32>
    %69 = arith.select %67, %68, %63 : vector<32x128xi1>, vector<32x128xf32>
    %70 = arith.truncf %55 : vector<32x128xf32> to vector<32x128xbf16>
    %c0_19 = arith.constant 0 : index
    %c0_20 = arith.constant 0 : index
    %c0_21 = arith.constant 0 : index
    %71 = vector.load %arg6[%c0_19, %c0_20, %c0_21] : memref<3x128x128xbf16, #tpu.memory_space<vmem>>, vector<1x128x128xbf16>
    %72 = vector.shape_cast %71 : vector<1x128x128xbf16> to vector<128x128xbf16>
    %cst_22 = arith.constant dense<0.000000e+00> : vector<32x128xf32>
    %73 = tpu.matmul %70, %72, %cst_22 {dimension_numbers = #tpu.dot_dimension_numbers<[1], [0], [0], [1], [0, 0, 1, 1], [], []>} : vector<32x128xbf16>, vector<128x128xbf16>, vector<32x128xf32> -> vector<32x128xf32>
    %74 = arith.truncf %9 : vector<32x128xf32> to vector<32x128xbf16>
    %c1 = arith.constant 1 : index
    %c0_23 = arith.constant 0 : index
    %c0_24 = arith.constant 0 : index
    %75 = vector.load %arg6[%c1, %c0_23, %c0_24] : memref<3x128x128xbf16, #tpu.memory_space<vmem>>, vector<1x128x128xbf16>
    %76 = vector.shape_cast %75 : vector<1x128x128xbf16> to vector<128x128xbf16>
    %cst_25 = arith.constant dense<0.000000e+00> : vector<32x128xf32>
    %77 = tpu.matmul %74, %76, %cst_25 {dimension_numbers = #tpu.dot_dimension_numbers<[1], [0], [0], [1], [0, 0, 1, 1], [], []>} : vector<32x128xbf16>, vector<128x128xbf16>, vector<32x128xf32> -> vector<32x128xf32>
    %78 = arith.addf %73, %77 : vector<32x128xf32>
    %79 = arith.truncf %69 : vector<32x128xf32> to vector<32x128xbf16>
    %c2 = arith.constant 2 : index
    %c0_26 = arith.constant 0 : index
    %c0_27 = arith.constant 0 : index
    %80 = vector.load %arg6[%c2, %c0_26, %c0_27] : memref<3x128x128xbf16, #tpu.memory_space<vmem>>, vector<1x128x128xbf16>
    %81 = vector.shape_cast %80 : vector<1x128x128xbf16> to vector<128x128xbf16>
    %cst_28 = arith.constant dense<0.000000e+00> : vector<32x128xf32>
    %82 = tpu.matmul %79, %81, %cst_28 {dimension_numbers = #tpu.dot_dimension_numbers<[1], [0], [0], [1], [0, 0, 1, 1], [], []>} : vector<32x128xbf16>, vector<128x128xbf16>, vector<32x128xf32> -> vector<32x128xf32>
    %83 = arith.addf %78, %82 : vector<32x128xf32>
    %84 = arith.truncf %83 : vector<32x128xf32> to vector<32x128xbf16>
    %c0_29 = arith.constant 0 : index
    %c0_30 = arith.constant 0 : index
    %85 = vector.load %arg7[%c0_29, %c0_30] : memref<32x128xbf16, #tpu.memory_space<vmem>>, vector<32x128xbf16>
    tpu.vector_store %arg7[%c0_29, %c0_30], %84 {strides = array<i32>} : memref<32x128xbf16, #tpu.memory_space<vmem>>, vector<32x128xbf16>,
    %cst_31 = arith.constant dense<0.000000e+00> : vector<128xf32>
    %86 = vector.multi_reduction <add>, %83, %cst_31 [0] : vector<32x128xf32> to vector<128xf32>
    %87 = vector.shape_cast %86 : vector<128xf32> to vector<1x128xf32>
    %88 = arith.mulf %83, %83 : vector<32x128xf32>
    %cst_32 = arith.constant dense<0.000000e+00> : vector<128xf32>
    %89 = vector.multi_reduction <add>, %88, %cst_32 [0] : vector<32x128xf32> to vector<128xf32>
    %90 = vector.shape_cast %89 : vector<128xf32> to vector<1x128xf32>
    %91 = tpu.concatenate %87, %90 in 0 : vector<1x128xf32>, vector<1x128xf32> -> vector<2x128xf32>
    %92 = vector.shape_cast %91 : vector<2x128xf32> to vector<1x2x128xf32>
    %c0_33 = arith.constant 0 : index
    %c0_34 = arith.constant 0 : index
    %c0_35 = arith.constant 0 : index
    %93 = vector.load %arg8[%c0_33, %c0_34, %c0_35] : memref<1x2x128xf32, #tpu.memory_space<vmem>>, vector<1x2x128xf32>
    tpu.vector_store %arg8[%c0_33, %c0_34, %c0_35], %92 {strides = array<i32>} : memref<1x2x128xf32, #tpu.memory_space<vmem>>, vector<1x2x128xf32>,
    return
  }
  func.func @transform_0(%arg0: i32) -> (i32, i32) {
    %c0_i32 = arith.constant 0 : i32
    %c0_i32_0 = arith.constant 0 : i32
    %c0_i32_1 = arith.constant 0 : i32
    return %c0_i32, %c0_i32_0 : i32, i32
  }
  func.func @transform_1(%arg0: i32) -> (i32, i32) {
    %c0_i32 = arith.constant 0 : i32
    %c0_i32_0 = arith.constant 0 : i32
    %c0_i32_1 = arith.constant 0 : i32
    return %c0_i32, %c0_i32_0 : i32, i32
  }
  func.func @transform_2(%arg0: i32) -> (i32, i32) {
    %c2_i32 = arith.constant 2 : i32
    %0 = arith.muli %arg0, %c2_i32 : i32
    %c1_i32 = arith.constant 1 : i32
    %1 = arith.subi %0, %c1_i32 : i32
    %c0_i32 = arith.constant 0 : i32
    %2 = arith.maxsi %1, %c0_i32 : i32
    %c0_i32_0 = arith.constant 0 : i32
    %c0_i32_1 = arith.constant 0 : i32
    return %2, %c0_i32_0 : i32, i32
  }
  func.func @transform_3(%arg0: i32) -> (i32, i32) {
    %c0_i32 = arith.constant 0 : i32
    %c0_i32_0 = arith.constant 0 : i32
    return %arg0, %c0_i32 : i32, i32
  }
  func.func @transform_4(%arg0: i32) -> (i32, i32) {
    %c1_i32 = arith.constant 1 : i32
    %0 = arith.addi %arg0, %c1_i32 : i32
    %c2_i32 = arith.constant 2 : i32
    %1 = arith.muli %0, %c2_i32 : i32
    %c1_i32_0 = arith.constant 1 : i32
    %2 = arith.minsi %1, %c1_i32_0 : i32
    %c0_i32 = arith.constant 0 : i32
    %c0_i32_1 = arith.constant 0 : i32
    return %2, %c0_i32 : i32, i32
  }
  func.func @transform_5(%arg0: i32) -> (i32, i32, i32) {
    %c0_i32 = arith.constant 0 : i32
    %c0_i32_0 = arith.constant 0 : i32
    %c0_i32_1 = arith.constant 0 : i32
    %c0_i32_2 = arith.constant 0 : i32
    return %c0_i32, %c0_i32_0, %c0_i32_1 : i32, i32, i32
  }
  func.func @transform_6(%arg0: i32) -> (i32, i32) {
    %c0_i32 = arith.constant 0 : i32
    %c0_i32_0 = arith.constant 0 : i32
    return %arg0, %c0_i32 : i32, i32
  }
  func.func @transform_7(%arg0: i32) -> (i32, i32, i32) {
    %c0_i32 = arith.constant 0 : i32
    %c0_i32_0 = arith.constant 0 : i32
    %c0_i32_1 = arith.constant 0 : i32
    return %arg0, %c0_i32, %c0_i32_0 : i32, i32, i32
  }
}

module attributes {stable_mosaic.version = 11 : i64} {
  func.func @_bn_relu_kernel(%arg0: i32, %arg1: memref<1x128xf32, #tpu.memory_space<vmem>>, %arg2: memref<1x128xf32, #tpu.memory_space<vmem>>, %arg3: memref<32x128xbf16, #tpu.memory_space<vmem>>, %arg4: memref<32x128xf32, #tpu.memory_space<vmem>>) attributes {dimension_semantics = [#tpu.dimension_semantics<parallel>], iteration_bounds = array<i64: 1>, scalar_prefetch = 0 : i64, scratch_operands = 0 : i64, tpu.core_type = #tpu.core_type<tc>, window_params = [{pipeline_mode = #tpu.pipeline_mode<synchronous>, transform_indices = @transform_0, window_bounds = array<i64: 1, 128>}, {pipeline_mode = #tpu.pipeline_mode<synchronous>, transform_indices = @transform_1, window_bounds = array<i64: 1, 128>}, {transform_indices = @transform_2, window_bounds = array<i64: 32, 128>}, {transform_indices = @transform_3, window_bounds = array<i64: 32, 128>}]} {
    %c0 = arith.constant 0 : index
    %c0_0 = arith.constant 0 : index
    %0 = vector.load %arg3[%c0, %c0_0] : memref<32x128xbf16, #tpu.memory_space<vmem>>, vector<32x128xbf16>
    %1 = arith.extf %0 : vector<32x128xbf16> to vector<32x128xf32>
    %c0_1 = arith.constant 0 : index
    %c0_2 = arith.constant 0 : index
    %2 = vector.load %arg1[%c0_1, %c0_2] : memref<1x128xf32, #tpu.memory_space<vmem>>, vector<1x128xf32>
    %3 = vector.broadcast %2 : vector<1x128xf32> to vector<32x128xf32>
    %4 = arith.mulf %1, %3 : vector<32x128xf32>
    %c0_3 = arith.constant 0 : index
    %c0_4 = arith.constant 0 : index
    %5 = vector.load %arg2[%c0_3, %c0_4] : memref<1x128xf32, #tpu.memory_space<vmem>>, vector<1x128xf32>
    %6 = vector.broadcast %5 : vector<1x128xf32> to vector<32x128xf32>
    %7 = arith.addf %4, %6 : vector<32x128xf32>
    %cst = arith.constant 0.000000e+00 : f32
    %8 = vector.broadcast %cst : f32 to vector<32x128xf32>
    %9 = arith.maximumf %7, %8 : vector<32x128xf32>
    %c0_5 = arith.constant 0 : index
    %c0_6 = arith.constant 0 : index
    %10 = vector.load %arg4[%c0_5, %c0_6] : memref<32x128xf32, #tpu.memory_space<vmem>>, vector<32x128xf32>
    tpu.vector_store %arg4[%c0_5, %c0_6], %9 {strides = array<i32>} : memref<32x128xf32, #tpu.memory_space<vmem>>, vector<32x128xf32>,
    return
  }
  func.func @transform_0(%arg0: i32) -> (i32, i32) {
    %c0_i32 = arith.constant 0 : i32
    %c0_i32_0 = arith.constant 0 : i32
    %c0_i32_1 = arith.constant 0 : i32
    return %c0_i32, %c0_i32_0 : i32, i32
  }
  func.func @transform_1(%arg0: i32) -> (i32, i32) {
    %c0_i32 = arith.constant 0 : i32
    %c0_i32_0 = arith.constant 0 : i32
    %c0_i32_1 = arith.constant 0 : i32
    return %c0_i32, %c0_i32_0 : i32, i32
  }
  func.func @transform_2(%arg0: i32) -> (i32, i32) {
    %c0_i32 = arith.constant 0 : i32
    %c0_i32_0 = arith.constant 0 : i32
    return %arg0, %c0_i32 : i32, i32
  }
  func.func @transform_3(%arg0: i32) -> (i32, i32) {
    %c0_i32 = arith.constant 0 : i32
    %c0_i32_0 = arith.constant 0 : i32
    return %arg0, %c0_i32 : i32, i32
  }
}

</mosaic_0001>

<bundles_post_ra>
// kernel: tile.28
= control target key start
LH: loop header
LB: loop body
LE: loop exit
PB: predicated region body
PF: predicated region fallthrough
CT: control target
= control target key end

     0   :  { %s28_s0 = inlined_call_operand.vmem [shape: f32[8], index: 0, kind: input, shape index: {}]   ;;  %s29_s1 = inlined_call_operand.vmem [shape: f32[16,8], index: 1, kind: output, shape index: {}]  }
   0x1   :  { %v4_v0 = vld [vmem:[%s28_s0] ss:$0 sm:$0xff] }
   0x2   :  { %5 = vst [vmem:[%s29_s1] sm:$0xff] %v4_v0 }
   0x3   :  { %8 = vst [vmem:[%s29_s1 + $0x8] sm:$0xff] %v4_v0 }

// kernel: tile.29
= control target key start
LH: loop header
LB: loop body
LE: loop exit
PB: predicated region body
PF: predicated region fallthrough
CT: control target
= control target key end

     0   :  { %s131_s10 = smov 120   ;;  %s132_s11 = smov 104   ;;  %vm3_vm0 = vcmask 64512   ;;  %vm9_vm1 = vcmask 1048512   ;;  %vm15_vm2 = vcmask 982912   ;;  %vm21_vm3 = vcmask 917312   ;;  %s207_s0 = inlined_call_operand.vmem [shape: f32[16,8], index: 0, kind: input, shape index: {}]   ;;  %s208_s1 = inlined_call_operand.vmem [shape: f32[1,128], index: 1, kind: output, shape index: {}]  }
   0x1   :  { %v101_v0 = vld [vmem:[%s207_s0 + $0xf] sm:$0x1]   ;;  %v103_v1 = vld [vmem:[%s207_s0 + $0xd] sm:$0x1]   ;;  %v105_v2 = vld [vmem:[%s207_s0 + $0xb] sm:$0x1]  }
   0x2   :  { %7 = vrot.lane.b32.xlu0 %v101_v0, %s131_s10  ;;  %19 = vrot.lane.b32.xlu1 %v103_v1, %s132_s11  ;;  %s133_s14 = smov 88   ;;  %v102_v3 = vld [vmem:[%s207_s0 + $0xe] sm:$0x1]   ;;  %v104_v4 = vld [vmem:[%s207_s0 + $0xc] sm:$0x1]   ;;  %s134_s19 = smov 112  }
   0x3   :  { %31 = vrot.lane.b32.xlu2 %v105_v2, %s133_s14  ;;  %s135_s20 = smov 96   ;;  %v106_v5 = vld [vmem:[%s207_s0 + $0xa] sm:$0x1]   ;;  %s136_s23 = smov 80   ;;  %v107_v6 = vld [vmem:[%s207_s0 + $0x9] sm:$0x1]  }
   0x4   :  { %v108_v7 = vld [vmem:[%s207_s0 + $0x8] sm:$0x1]   ;;  %s137_s28 = smov 72   ;;  %s138_s29 = smov 64   ;;  %v109_v8 = vld [vmem:[%s207_s0 + $0x7] sm:$0x1]  }
   0x5   :  { %s139_s3 = smov 56   ;;  %v110_v9 = vld [vmem:[%s207_s0 + $0x6] sm:$0x1]   ;;  %v111_v10 = vld [vmem:[%s207_s0 + $0x5] sm:$0x1]   ;;  %s140_s8 = smov 48  }
   0x6   :  { %s141_s9 = smov 40   ;;  %v112_v11 = vld [vmem:[%s207_s0 + $0x4] sm:$0x1]   ;;  %s142_s12 = smov 32   ;;  %v113_v12 = vld [vmem:[%s207_s0 + $0x3] sm:$0x1]  }
   0x7   :  { %v114_v13 = vld [vmem:[%s207_s0 + $0x2] sm:$0x1]   ;;  %s143_s17 = smov 24   ;;  %s144_s18 = smov 16   ;;  %v115_v14 = vld [vmem:[%s207_s0 + $0x1] sm:$0x1]  }
   0x8   :  { %s145_s21 = smov 8   ;;  %v2_v15 = vld [vmem:[%s207_s0] sm:$0x1]   ;;  %vm27_vm4 = vcmask 851712   ;;  %vm33_vm5 = vcmask 786112   ;;  %vm39_vm6 = vcmask 720512  }
   0x9   :  { %4 = vst.msk [vmem:[#allocation0] sm:$0x1] %vm3_vm0, %v2_v15   ;;  %vm45_vm7 = vcmask 654912   ;;  %vm51_vm8 = vcmask 589312   ;;  %vm57_vm9 = vcmask 523712   ;;  %vm63_vm10 = vcmask 458112  }
   0xa   :  { %13 = vrot.lane.b32.xlu0 %v102_v3, %s134_s19  ;;  %25 = vrot.lane.b32.xlu1 %v104_v4, %s135_s20  ;;  %vm69_vm11 = vcmask 392512   ;;  %vm75_vm12 = vcmask 326912   ;;  %vm81_vm13 = vcmask 261312   ;;  %vm87_vm14 = vcmask 195712  }
   0xb   :  { %37 = vrot.lane.b32.xlu2 %v106_v5, %s136_s23  ;;  %vm93_vm15 = vcmask 130112  }
  0x12   :  { %43 = vrot.lane.b32.xlu0 %v107_v6, %s137_s28  ;;  %49 = vrot.lane.b32.xlu1 %v108_v7, %s138_s29 }
  0x13   :  { %55 = vrot.lane.b32.xlu2 %v109_v8, %s139_s3 }
  0x1a   :  { %61 = vrot.lane.b32.xlu0 %v110_v9, %s140_s8  ;;  %67 = vrot.lane.b32.xlu1 %v111_v10, %s141_s9 }
  0x1b   :  { %73 = vrot.lane.b32.xlu2 %v112_v11, %s142_s12 }
  0x22   :  { %79 = vrot.lane.b32.xlu0 %v113_v12, %s143_s17  ;;  %85 = vrot.lane.b32.xlu1 %v114_v13, %s144_s18 }
  0x23   :  { %91 = vrot.lane.b32.xlu2 %v115_v14, %s145_s21 }
  0x5d   :  { %v32_v16 = vpop.permute.xlu2 %31  }
  0x65   :  { %v38_v17 = vpop.permute.xlu2 %37  }
  0x6d   :  { %v56_v18 = vpop.permute.xlu2 %55  }
  0x74   :  { %v8_v19 = vpop.permute.xlu0 %7   ;;  %v20_v20 = vpop.permute.xlu1 %19  }
  0x75   :  { %10 = vst.msk [vmem:[#allocation0] sm:$0x1] %vm9_vm1, %v8_v19   ;;  %v74_v21 = vpop.permute.xlu2 %73  }
  0x7c   :  { %v14_v22 = vpop.permute.xlu0 %13   ;;  %v26_v23 = vpop.permute.xlu1 %25  }
  0x7d   :  { %16 = vst.msk [vmem:[#allocation0] sm:$0x1] %vm15_vm2, %v14_v22   ;;  %v92_v24 = vpop.permute.xlu2 %91  }
  0x7e   :  { %22 = vst.msk [vmem:[#allocation0] sm:$0x1] %vm21_vm3, %v20_v20  }
  0x7f   :  { %28 = vst.msk [vmem:[#allocation0] sm:$0x1] %vm27_vm4, %v26_v23  }
  0x80   :  { %34 = vst.msk [vmem:[#allocation0] sm:$0x1] %vm33_vm5, %v32_v16  }
  0x81   :  { %40 = vst.msk [vmem:[#allocation0] sm:$0x1] %vm39_vm6, %v38_v17  }
  0x84   :  { %v44_v25 = vpop.permute.xlu0 %43   ;;  %v50_v26 = vpop.permute.xlu1 %49  }
  0x85   :  { %46 = vst.msk [vmem:[#allocation0] sm:$0x1] %vm45_vm7, %v44_v25  }
  0x86   :  { %52 = vst.msk [vmem:[#allocation0] sm:$0x1] %vm51_vm8, %v50_v26  }
  0x87   :  { %58 = vst.msk [vmem:[#allocation0] sm:$0x1] %vm57_vm9, %v56_v18  }
  0x8c   :  { %v62_v27 = vpop.permute.xlu0 %61   ;;  %v68_v28 = vpop.permute.xlu1 %67  }
  0x8d   :  { %64 = vst.msk [vmem:[#allocation0] sm:$0x1] %vm63_vm10, %v62_v27  }
  0x8e   :  { %70 = vst.msk [vmem:[#allocation0] sm:$0x1] %vm69_vm11, %v68_v28  }
  0x8f   :  { %76 = vst.msk [vmem:[#allocation0] sm:$0x1] %vm75_vm12, %v74_v21  }
  0x94   :  { %v80_v29 = vpop.permute.xlu0 %79   ;;  %v86_v30 = vpop.permute.xlu1 %85  }
  0x95   :  { %82 = vst.msk [vmem:[#allocation0] sm:$0x1] %vm81_vm13, %v80_v29  }
  0x96   :  { %88 = vst.msk [vmem:[#allocation0] sm:$0x1] %vm87_vm14, %v86_v30  }
  0x97   :  { %94 = vst.msk [vmem:[#allocation0] sm:$0x1] %vm93_vm15, %v92_v24  }
  0x9e   :  { %v97_v31 = vld [vmem:[#allocation0] sm:$0x1] }
  0x9f   :  { %100 = vst [vmem:[%s208_s1] sm:$0x1] %v97_v31 }

// kernel: unet_down.3
= control target key start
LH: loop header
LB: loop body
LE: loop exit
PB: predicated region body
PF: predicated region fallthrough
CT: control target
= control target key end

     0   :  { %v106_v0 = vlaneseq  ;;  %vm294_vm5 = vcmask 523264   ;;  %vm463_vm9 = vcmask 1040384   ;;  %s739_s0 = inlined_call_operand.vmem [shape: f32[1,64], index: 0, kind: input, shape index: {}, may-alias: {0,1}]   ;;  %s740_s1 = inlined_call_operand.vmem [shape: f32[1,64], index: 1, kind: input, shape index: {}, may-alias: {0,1}]   ;;  %s741_s5 = inlined_call_operand.vmem [shape: bf16[3,64,128], index: 5, kind: input, shape index: {}]   ;;  %s742_s3 = inlined_call_operand.vmem [shape: f32[32,64], index: 3, kind: input, shape index: {}, may-alias: {2,3,4}]   ;;  %s743_s2 = inlined_call_operand.vmem [shape: f32[32,64], index: 2, kind: input, shape index: {}, may-alias: {2,3,4}]   ;;  %s744_s4 = inlined_call_operand.vmem [shape: f32[32,64], index: 4, kind: input, shape index: {}, may-alias: {2,3,4}]   ;;  %s745_s6 = inlined_call_operand.vmem [shape: bf16[32,128], index: 6, kind: output, shape index: {0}]   ;;  %s746_s7 = inlined_call_operand.vmem [shape: f32[1,2,128], index: 7, kind: output, shape index: {1}]  }
   0x1   :  { %v564_v1 = vld [vmem:[%s741_s5 + $0x38] sm:$0xff]  ;;  %v563_v5 = vld [vmem:[%s741_s5 + $0x30] sm:$0xff]  ;;  %v562_v9 = vld [vmem:[%s741_s5 + $0x28] sm:$0xff] }
   0x2   :  { %v560_v2 = vld [vmem:[%s741_s5 + $0x18] sm:$0xff]  ;;  %v635_v4 = vshrl.u32 %v106_v0, 7  ;;  %305 = vmatpush.bf16.msra.mxu0 %v564_v1  ;;  %v559_v6 = vld [vmem:[%s741_s5 + $0x10] sm:$0xff]  ;;  %580 = vmatpush.bf16.msra.mxu3 %v564_v1  ;;  %v558_v10 = vld [vmem:[%s741_s5 + $0x8] sm:$0xff] }
   0x3   :  { %v568_v3 = vld [vmem:[%s741_s5 + $0x58] sm:$0xff]  ;;  %354 = vmatpush.bf16.msra.mxu1 %v560_v2  ;;  %v567_v7 = vld [vmem:[%s741_s5 + $0x50] sm:$0xff]  ;;  %v100_v11 = vld [vmem:[%s742_s3] sm:$0xff] }
   0x4   :  { %414 = vmatpush.bf16.msra.mxu2 %v568_v3  ;;  %v121_v8 = vand.u32 15, %v635_v4  ;;  %v101_v12 = vld [vmem:[%s742_s3 + $0x8] sm:$0xff]  ;;  %v662_v13 = vld [vmem:[%s742_s3 + $0x18] sm:$0xff]  ;;  %vm169_vm0 = vcmp.lt.s32.totalorder %v635_v4, 1  ;;  %v108_v14 = vadd.s32 8, %v635_v4  ;;  %v165_v15 = vrot.slane %v100_v11, 7 }
   0x5   :  { %v208_v16 = vrot.slane %v101_v12, 1  ;;  %vm174_vm1 = vcmp.eq.s32.totalorder %v635_v4, 0  ;;  %vm211_vm2 = vcmp.lt.s32.totalorder %v635_v4, 7  ;;  %v166_v17 = vrot.slane %v101_v12, 7  ;;  %v584_v19 = vld [vmem:[%s743_s2 + $0xf] ss:$0 sm:$0xff] }
   0x6   :  { %306 = vmatpush.bf16.msra.mxu0 %v563_v5  ;;  %v168_v18 = vrot.slane %v662_v13, 7  ;;  %v102_v20 = vld [vmem:[%s742_s3 + $0x10] sm:$0xff]  ;;  %v128_v21 = vand.u32 15, %v108_v14  ;;  %v566_v22 = vld [vmem:[%s741_s5 + $0x48] sm:$0xff]  ;;  %581 = vmatpush.bf16.msra.mxu3 %v563_v5  ;;  %v207_v23 = vrot.slane %v100_v11, 1  ;;  %vm678_vm3 = vcmp.eq.s32.totalorder %v121_v8, 0 }
   0x7   :  { %355 = vmatpush.bf16.msra.mxu1 %v559_v6  ;;  %v209_v25 = vrot.slane %v102_v20, 1  ;;  %v561_v30 = vld [vmem:[%s741_s5 + $0x20] sm:$0xff]  ;;  %v172_v32 = vsel %vm169_vm0, %v165_v15, %v166_v17  ;;  %v259_v37 = vpack.c.bf16 %v101_v12, %v100_v11  ;;  %v260_v40 = vpack.c.bf16 %v662_v13, %v102_v20  ;;  %v585_v47 = vld [vmem:[%s744_s4 + $0x10] ss:$0 sm:$0xff] }
   0x8   :  { %415 = vmatpush.bf16.msra.mxu2 %v567_v7  ;;  %v173_v26 = vsel %vm169_vm0, %v168_v18, %v165_v15  ;;  %vm684_vm4 = vcmp.eq.s32.totalorder %v128_v21, 15  ;;  %v557_v31 = vld [vmem:[%s741_s5] sm:$0xff]  ;;  %v214_v35 = vsel %vm211_vm2, %v207_v23, %v208_v16  ;;  %v109_v41 = vadd.s32 16, %v635_v4 }
   0x9   :  { %v187_v28 = vsel %vm174_vm1, %v584_v19, %v173_v26  ;;  %v213_v29 = vsel %vm211_vm2, %v208_v16, %v209_v25  ;;  %v565_v34 = vld [vmem:[%s741_s5 + $0x40] sm:$0xff]  ;;  %v110_v42 = vadd.s32 24, %v635_v4  ;;  %v210_v43 = vrot.slane %v662_v13, 1 }
   0xa   :  { %307 = vmatpush.bf16.msra.mxu0 %v562_v9  ;;  %v203_v33 = vsel %vm678_vm3, 0.0, %v187_v28  ;;  %582 = vmatpush.bf16.msra.mxu3 %v562_v9  ;;  %v246_v36 = vsel %vm684_vm4, 0.0, %v213_v29  ;;  %v135_v44 = vand.u32 15, %v109_v41  ;;  %v167_v45 = vrot.slane %v102_v20, 7 }
   0xb   :  { %356 = vmatpush.bf16.msra.mxu1 %v558_v10  ;;  %v249_v38 = vpack.c.bf16 %v172_v32, %v203_v33  ;;  %v369_v39 = vpack.c.bf16 %v246_v36, %v214_v35  ;;  %v142_v46 = vand.u32 15, %v110_v42  ;;  %v215_v48 = vsel %vm211_vm2, %v210_v43, %v207_v23 }
   0xc   :  { %416 = vmatpush.bf16.msra.mxu2 %v566_v22  ;;  %vm219_vm6 = vcmp.eq.s32.totalorder %v110_v42, 31  ;;  %v171_v49 = vsel %vm169_vm0, %v166_v17, %v167_v45  ;;  %vm193_vm7 = vcmp.eq.s32.totalorder %v135_v44, 0  ;;  %v170_v51 = vsel %vm169_vm0, %v167_v45, %v168_v18 }
   0xd   :  { %v232_v50 = vsel %vm219_vm6, %v585_v47, %v215_v48  ;;  %vm236_vm8 = vcmp.eq.s32.totalorder %v142_v46, 15  ;;  %v205_v52 = vsel %vm193_vm7, 0.0, %v171_v49  ;;  %v212_v53 = vsel %vm211_vm2, %v209_v25, %v210_v43 }
   0xe   :  { %308 = vmatpush.bf16.msra.mxu0 %v561_v30  ;;  %583 = vmatpush.bf16.msra.mxu3 %v561_v30  ;;  %v248_v54 = vsel %vm236_vm8, 0.0, %v232_v50  ;;  %v250_v55 = vpack.c.bf16 %v170_v51, %v205_v52 }
   0xf   :  { %357 = vmatpush.bf16.msra.mxu1 %v557_v31  ;;  %v370_v56 = vpack.c.bf16 %v248_v54, %v212_v53 }
  0x10   :  { %417 = vmatpush.bf16.msra.mxu2 %v565_v34 }
  0x11   :  { %511 = vmatmul.msk.bf16.vlgmr.msra.gmra.mxu0 %vm294_vm5, %v259_v37  ;;  %512 = vmatmul.msk.bf16.vlgmr.msra.gmra.mxu3 %vm294_vm5, %v260_v40 }
  0x12   :  { %529 = vmatmul.msk.bf16.vlgmr.msra.gmra.mxu1 %vm294_vm5, %v249_v38 }
  0x13   :  { %555 = vmatmul.msk.bf16.vlgmr.msra.gmra.mxu2 %vm294_vm5, %v369_v39 }
  0x22   :  { %530 = vmatmul.msk.bf16.gmra.mxu1 %vm294_vm5, %v250_v55 }
  0x23   :  { %556 = vmatmul.msk.bf16.gmra.mxu2 %vm294_vm5, %v370_v56 }
  0x8e   :  { %v310_v58 = vpop.f32.mrf.mxu0 }
  0x8f   :  { %v359_v57 = vpop.f32.mrf.mxu1 }
  0x90   :  { %v360_v62 = vadd.f32 %v359_v57, %v310_v58 }
  0x94   :  { %v315_v5 = vpop.f32.mrf.mxu3 }
  0x96   :  { %v419_v59 = vpop.f32.mrf.mxu2  ;;  %v312_v61 = vpop.f32.mrf.mxu0 }
  0x97   :  { %v361_v60 = vpop.f32.mrf.mxu1  ;;  %v429_v1 = vadd.f32 %v419_v59, %v360_v62 }
  0x98   :  { %v362_v63 = vadd.f32 %v361_v60, %v312_v61 }
  0x99   :  { %v450_v12 = vmul.f32 %v429_v1, %v429_v1 }
  0x9c   :  { %v317_v11 = vpop.f32.mrf.mxu3 }
  0x9e   :  { %v421_v0 = vpop.f32.mrf.mxu2 }
  0x9f   :  { %v430_v2 = vadd.f32 %v421_v0, %v362_v63  ;;  %v364_v3 = vpop.f32.mrf.mxu1 }
  0xa0   :  { %v365_v6 = vadd.f32 %v364_v3, %v315_v5 }
  0xa1   :  { %v572_v4 = vpack.c.bf16 %v430_v2, %v429_v1  ;;  %v451_v10 = vmul.f32 %v430_v2, %v430_v2  ;;  %v441_v13 = vadd.f32 %v430_v2, %v429_v1 }
  0xa3   :  { %573 = vst [vmem:[%s745_s6] sm:$0xff] %v572_v4   ;;  %v454_v17 = vadd.f32 %v451_v10, %v450_v12 }
  0xa6   :  { %v424_v7 = vpop.f32.mrf.mxu2 }
  0xa7   :  { %v431_v8 = vadd.f32 %v424_v7, %v365_v6  ;;  %v366_v9 = vpop.f32.mrf.mxu1 }
  0xa8   :  { %v367_v15 = vadd.f32 %v366_v9, %v317_v11 }
  0xa9   :  { %v452_v14 = vmul.f32 %v431_v8, %v431_v8  ;;  %v442_v18 = vadd.f32 %v441_v13, %v431_v8 }
  0xab   :  { %v455_v20 = vadd.f32 %v454_v17, %v452_v14 }
  0xae   :  { %v426_v16 = vpop.f32.mrf.mxu2 }
  0xaf   :  { %v432_v19 = vadd.f32 %v426_v16, %v367_v15 }
  0xb1   :  { %v577_v21 = vpack.c.bf16 %v432_v19, %v431_v8  ;;  %v443_v22 = vadd.f32 %v442_v18, %v432_v19  ;;  %v453_v23 = vmul.f32 %v432_v19, %v432_v19 }
  0xb3   :  { %579 = vst [vmem:[%s745_s6 + $0x8] sm:$0xff] %v577_v21   ;;  %v444_v24 = vrot.slane %v443_v22, 4  ;;  %v456_v25 = vadd.f32 %v455_v20, %v453_v23 }
  0xb5   :  { %v445_v26 = vadd.f32 %v444_v24, %v443_v22  ;;  %v457_v27 = vrot.slane %v456_v25, 4 }
  0xb7   :  { %v446_v28 = vrot.slane %v445_v26, 2  ;;  %v458_v29 = vadd.f32 %v457_v27, %v456_v25 }
  0xb9   :  { %v447_v30 = vadd.f32 %v446_v28, %v445_v26  ;;  %v459_v31 = vrot.slane %v458_v29, 2 }
  0xbb   :  { %v448_v32 = vrot.slane %v447_v30, 1  ;;  %v460_v33 = vadd.f32 %v459_v31, %v458_v29 }
  0xbd   :  { %v461_v34 = vrot.slane %v460_v33, 1  ;;  %v449_v35 = vadd.f32 %v448_v32, %v447_v30 }
  0xbf   :  { %v462_v36 = vadd.f32 %v461_v34, %v460_v33 }
  0xc1   :  { %v464_v37 = vsel %vm463_vm9, %v449_v35, %v462_v36 }
  0xc2   :  { %465 = vst [vmem:[%s746_s7] sm:$0x3] %v464_v37 }

// kernel: unet_down.4
= control target key start
LH: loop header
LB: loop body
LE: loop exit
PB: predicated region body
PF: predicated region fallthrough
CT: control target
= control target key end

     0   :  { %v137_v25 = vlaneseq  ;;  %vm798_vm5 = vmmov 1   ;;  %vm571_vm13 = vcmask 1040384   ;;  %s999_s5 = inlined_call_operand.vmem [shape: bf16[3,128,128], index: 5, kind: input, shape index: {}]   ;;  %s1000_s3 = inlined_call_operand.vmem [shape: bf16[32,128], index: 3, kind: input, shape index: {}, may-alias: {2,3,4}]   ;;  %s1001_s0 = inlined_call_operand.vmem [shape: f32[1,128], index: 0, kind: input, shape index: {}]   ;;  %s1002_s1 = inlined_call_operand.vmem [shape: f32[1,128], index: 1, kind: input, shape index: {}]   ;;  %s1003_s2 = inlined_call_operand.vmem [shape: bf16[32,128], index: 2, kind: input, shape index: {}, may-alias: {2,3,4}]   ;;  %s1004_s4 = inlined_call_operand.vmem [shape: bf16[32,128], index: 4, kind: input, shape index: {}, may-alias: {2,3,4}]   ;;  %s1005_s6 = inlined_call_operand.vmem [shape: bf16[32,128], index: 6, kind: output, shape index: {0}]   ;;  %s1006_s7 = inlined_call_operand.vmem [shape: f32[1,2,128], index: 7, kind: output, shape index: {1}]  }
   0x1   :  { %v754_v0 = vld [vmem:[%s999_s5 + $0x78] sm:$0xff]  ;;  %v753_v3 = vld [vmem:[%s999_s5 + $0x70] sm:$0xff]  ;;  %v752_v6 = vld [vmem:[%s999_s5 + $0x68] sm:$0xff] }
   0x2   :  { %v746_v1 = vld [vmem:[%s999_s5 + $0x38] sm:$0xff]  ;;  %365 = vmatpush.bf16.msra.mxu0 %v754_v0  ;;  %v745_v4 = vld [vmem:[%s999_s5 + $0x30] sm:$0xff]  ;;  %787 = vmatpush.bf16.msra.mxu3 %v754_v0  ;;  %v744_v7 = vld [vmem:[%s999_s5 + $0x28] sm:$0xff]  ;;  %v903_v38 = vshrl.u32 %v137_v25, 7 }
   0x3   :  { %v762_v2 = vld [vmem:[%s999_s5 + $0xb8] sm:$0xff]  ;;  %432 = vmatpush.bf16.msra.mxu1 %v746_v1  ;;  %v761_v5 = vld [vmem:[%s999_s5 + $0xb0] sm:$0xff]  ;;  %v760_v8 = vld [vmem:[%s999_s5 + $0xa8] sm:$0xff] }
   0x4   :  { %518 = vmatpush.bf16.msra.mxu2 %v762_v2  ;;  %v764_v9 = vld [vmem:[%s1000_s3] sm:$0xff]   ;;  %v781_v12 = vld [vmem:[%s1000_s3 + $0x8] sm:$0xff]   ;;  %v750_v29 = vld [vmem:[%s999_s5 + $0x58] sm:$0xff]  ;;  %vm200_vm0 = vcmp.lt.s32.totalorder %v903_v38, 1  ;;  %v139_v48 = vadd.s32 8, %v903_v38  ;;  %v152_v49 = vand.u32 15, %v903_v38 }
   0x5   :  { %v765_v10 = vunpack.c.l.bf16 %v764_v9  ;;  %v766_v11 = vunpack.c.h.bf16 %v764_v9  ;;  %v796_v13 = vld [vmem:[%s1001_s0] ss:$0 sm:$0xff]  ;;  %v769_v17 = vunpack.c.l.bf16 %v781_v12  ;;  %v770_v18 = vunpack.c.h.bf16 %v781_v12  ;;  %v127_v19 = vld [vmem:[%s1003_s2 + $0x4] sm:$0x8]  ;;  %v742_v30 = vld [vmem:[%s999_s5 + $0x18] sm:$0xff] }
   0x6   :  { %366 = vmatpush.bf16.msra.mxu0 %v753_v3  ;;  %788 = vmatpush.bf16.msra.mxu3 %v753_v3  ;;  %v797_v14 = vld [vmem:[%s1002_s1] ss:$0 sm:$0xff]  ;;  %v128_v23 = vunpack.c.l.bf16 %v127_v19  ;;  %v758_v33 = vld [vmem:[%s999_s5 + $0x98] sm:$0xff]  ;;  %v749_v39 = vld [vmem:[%s999_s5 + $0x50] sm:$0xff]  ;;  %vm205_vm1 = vcmp.eq.s32.totalorder %v903_v38, 0  ;;  %v159_v61 = vand.u32 15, %v139_v48 }
   0x7   :  { %433 = vmatpush.bf16.msra.mxu1 %v745_v4  ;;  %v751_v15 = vld [vmem:[%s999_s5 + $0x60] sm:$0xff]  ;;  %v112_v21 = vmul.f32 %v796_v13, %v765_v10  ;;  %v113_v22 = vmul.f32 %v796_v13, %v766_v11  ;;  %v115_v24 = vmul.f32 %v796_v13, %v770_v18  ;;  %v114_v26 = vmul.f32 %v796_v13, %v769_v17  ;;  %v741_v40 = vld [vmem:[%s999_s5 + $0x10] sm:$0xff]  ;;  %v594_v47 = vld [vmem:[%s1004_s4 + $0x8] sm:$0x1] }
   0x8   :  { %519 = vmatpush.bf16.msra.mxu2 %v761_v5  ;;  %v743_v16 = vld [vmem:[%s999_s5 + $0x20] sm:$0xff]  ;;  %v129_v28 = vmul.f32 %v796_v13, %v128_v23  ;;  %v757_v43 = vld [vmem:[%s999_s5 + $0x90] sm:$0xff]  ;;  %v748_v50 = vld [vmem:[%s999_s5 + $0x48] sm:$0xff]  ;;  %v133_v54 = vunpack.c.l.bf16 %v594_v47  ;;  %vm242_vm2 = vcmp.lt.s32.totalorder %v903_v38, 7  ;;  %vm782_vm3 = vcmp.ne.s32.totalorder %v152_v49, 0 }
   0x9   :  { %v759_v20 = vld [vmem:[%s999_s5 + $0xa0] sm:$0xff]  ;;  %v119_v27 = vadd.f32 %v797_v14, %v112_v21  ;;  %v120_v31 = vadd.f32 %v797_v14, %v113_v22  ;;  %v122_v32 = vadd.f32 %v797_v14, %v115_v24  ;;  %v121_v36 = vadd.f32 %v797_v14, %v114_v26  ;;  %v740_v51 = vld [vmem:[%s999_s5 + $0x8] sm:$0xff]  ;;  %vm676_vm6 = vmpackc.low %vm798_vm5, %vm782_vm3 }
   0xa   :  { %367 = vmatpush.bf16.msra.mxu0 %v752_v6  ;;  %789 = vmatpush.bf16.msra.mxu3 %v752_v6  ;;  %v130_v35 = vadd.f32 %v797_v14, %v129_v28  ;;  %v756_v55 = vld [vmem:[%s999_s5 + $0x88] sm:$0xff]  ;;  %v99_v60 = vld [vmem:[%s1001_s0] sm:$0x1]  ;;  %vm784_vm4 = vcmp.ne.s32.totalorder %v159_v61, 15  ;;  %v140_v12 = vadd.s32 16, %v903_v38  ;;  %v141_v14 = vadd.s32 24, %v903_v38 }
   0xb   :  { %434 = vmatpush.bf16.msra.mxu1 %v744_v7  ;;  %v899_v34 = vmax.f32 %v119_v27, 0.0  ;;  %v901_v37 = vmax.f32 %v122_v32, 0.0  ;;  %v911_v41 = vmax.f32 %v120_v31, 0.0  ;;  %v918_v46 = vmax.f32 %v121_v36, 0.0  ;;  %v747_v62 = vld [vmem:[%s999_s5 + $0x40] sm:$0xff]  ;;  %vm732_vm7 = vmpackc.low %vm784_vm4, %vm798_vm5 }
   0xc   :  { %520 = vmatpush.bf16.msra.mxu2 %v760_v8  ;;  %v131_v42 = vmax.f32 %v130_v35, 0.0  ;;  %v739_v63 = vld [vmem:[%s999_s5] sm:$0xff]  ;;  %v134_v5 = vmul.f32 %v133_v54, %v99_v60  ;;  %v166_v17 = vand.u32 15, %v140_v12  ;;  %v173_v19 = vand.u32 15, %v141_v14 }
   0xd   :  { %v196_v44 = vrot.slane %v899_v34, 7  ;;  %v199_v45 = vrot.slane %v901_v37, 7  ;;  %v197_v52 = vrot.slane %v911_v41, 7  ;;  %v238_v57 = vrot.slane %v899_v34, 1  ;;  %v755_v2 = vld [vmem:[%s999_s5 + $0x80] sm:$0xff] }
   0xe   :  { %368 = vmatpush.bf16.msra.mxu0 %v751_v15  ;;  %790 = vmatpush.bf16.msra.mxu3 %v751_v15  ;;  %v217_v53 = vperm.slane %v131_v42, 7  ;;  %v239_v58 = vrot.slane %v911_v41, 1  ;;  %v240_v59 = vrot.slane %v918_v46, 1  ;;  %v100_v6 = vld [vmem:[%s1002_s1] sm:$0x1]  ;;  %v298_v7 = vpack.c.bf16 %v911_v41, %v899_v34 }
   0xf   :  { %435 = vmatpush.bf16.msra.mxu1 %v743_v16  ;;  %v204_v56 = vsel %vm200_vm0, %v199_v45, %v196_v44  ;;  %v203_v0 = vsel %vm200_vm0, %v196_v44, %v197_v52  ;;  %v299_v10 = vpack.c.bf16 %v901_v37, %v918_v46  ;;  %v135_v11 = vadd.f32 %v134_v5, %v100_v6 }
  0x10   :  { %521 = vmatpush.bf16.msra.mxu2 %v759_v20  ;;  %v218_v1 = vsel %vm205_vm1, %v217_v53, %v204_v56  ;;  %v244_v3 = vsel %vm242_vm2, %v239_v58, %v240_v59  ;;  %v245_v4 = vsel %vm242_vm2, %v238_v57, %v239_v58  ;;  %v241_v15 = vrot.slane %v901_v37, 1 }
  0x11   :  { %v677_v8 = vpack.c.bf16 %v203_v0, %v218_v1  ;;  %v733_v9 = vpack.c.bf16 %v244_v3, %v245_v4  ;;  %v136_v13 = vmax.f32 %v135_v11, 0.0  ;;  %v198_v16 = vrot.slane %v918_v46, 7 }
  0x12   :  { %369 = vmatpush.bf16.msra.mxu0 %v750_v29  ;;  %791 = vmatpush.bf16.msra.mxu3 %v750_v29  ;;  %v246_v20 = vsel %vm242_vm2, %v241_v15, %v238_v57  ;;  %vm250_vm8 = vcmp.eq.s32.totalorder %v141_v14, 31  ;;  %vm783_vm9 = vcmp.ne.s32.totalorder %v166_v17, 0  ;;  %v243_v23 = vsel %vm242_vm2, %v240_v59, %v241_v15 }
  0x13   :  { %436 = vmatpush.bf16.msra.mxu1 %v742_v30  ;;  %v259_v18 = vperm.slane %v136_v13, 0  ;;  %v201_v21 = vsel %vm200_vm0, %v198_v16, %v199_v45  ;;  %v202_v22 = vsel %vm200_vm0, %v197_v52, %v198_v16  ;;  %vm785_vm10 = vcmp.ne.s32.totalorder %v173_v19, 15  ;;  %vm680_vm11 = vmpackc.low %vm798_vm5, %vm783_vm9 }
  0x14   :  { %522 = vmatpush.bf16.msra.mxu2 %v758_v33  ;;  %v681_v25 = vpack.c.bf16 %v201_v21, %v202_v22  ;;  %vm736_vm12 = vmpackc.low %vm785_vm10, %vm798_vm5 }
  0x15   :  { %v263_v24 = vsel %vm250_vm8, %v259_v18, %v246_v20 }
  0x16   :  { %370 = vmatpush.bf16.msra.mxu0 %v749_v39  ;;  %792 = vmatpush.bf16.msra.mxu3 %v749_v39  ;;  %v737_v26 = vpack.c.bf16 %v263_v24, %v243_v23 }
  0x17   :  { %437 = vmatpush.bf16.msra.mxu1 %v741_v40 }
  0x18   :  { %523 = vmatpush.bf16.msra.mxu2 %v757_v43 }
  0x1a   :  { %371 = vmatpush.bf16.msra.mxu0 %v748_v50  ;;  %793 = vmatpush.bf16.msra.mxu3 %v748_v50 }
  0x1b   :  { %438 = vmatpush.bf16.msra.mxu1 %v740_v51 }
  0x1c   :  { %524 = vmatpush.bf16.msra.mxu2 %v756_v55 }
  0x1e   :  { %372 = vmatpush.bf16.msra.mxu0 %v747_v62  ;;  %794 = vmatpush.bf16.msra.mxu3 %v747_v62 }
  0x1f   :  { %439 = vmatpush.bf16.msra.mxu1 %v739_v63 }
  0x20   :  { %525 = vmatpush.bf16.msra.mxu2 %v755_v2 }
  0x21   :  { %373 = vmatmul.bf16.vlgmr.msra.gmra.mxu0 %v298_v7  ;;  %378 = vmatmul.bf16.vlgmr.msra.gmra.mxu3 %v299_v10 }
  0x22   :  { %678 = vmatmul.msk.bf16.vlgmr.msra.gmra.mxu1 %vm676_vm6, %v677_v8 }
  0x23   :  { %734 = vmatmul.msk.bf16.vlgmr.msra.gmra.mxu2 %vm732_vm7, %v733_v9 }
  0x32   :  { %682 = vmatmul.msk.bf16.gmra.mxu1 %vm680_vm11, %v681_v25 }
  0x33   :  { %738 = vmatmul.msk.bf16.gmra.mxu2 %vm736_vm12, %v737_v26 }
  0x9e   :  { %v374_v28 = vpop.f32.mrf.mxu0 }
  0x9f   :  { %v441_v27 = vpop.f32.mrf.mxu1 }
  0xa0   :  { %v442_v32 = vadd.f32 %v441_v27, %v374_v28 }
  0xa4   :  { %v379_v39 = vpop.f32.mrf.mxu3 }
  0xa6   :  { %v527_v29 = vpop.f32.mrf.mxu2  ;;  %v376_v31 = vpop.f32.mrf.mxu0 }
  0xa7   :  { %v443_v30 = vpop.f32.mrf.mxu1  ;;  %v537_v35 = vadd.f32 %v527_v29, %v442_v32 }
  0xa8   :  { %v444_v33 = vadd.f32 %v443_v30, %v376_v31 }
  0xa9   :  { %v558_v46 = vmul.f32 %v537_v35, %v537_v35 }
  0xac   :  { %v381_v45 = vpop.f32.mrf.mxu3 }
  0xae   :  { %v529_v34 = vpop.f32.mrf.mxu2 }
  0xaf   :  { %v538_v36 = vadd.f32 %v529_v34, %v444_v33  ;;  %v446_v37 = vpop.f32.mrf.mxu1 }
  0xb0   :  { %v447_v40 = vadd.f32 %v446_v37, %v379_v39 }
  0xb1   :  { %v774_v38 = vpack.c.bf16 %v538_v36, %v537_v35  ;;  %v559_v44 = vmul.f32 %v538_v36, %v538_v36  ;;  %v549_v47 = vadd.f32 %v538_v36, %v537_v35 }
  0xb3   :  { %775 = vst [vmem:[%s1005_s6] sm:$0xff] %v774_v38   ;;  %v562_v51 = vadd.f32 %v559_v44, %v558_v46 }
  0xb6   :  { %v532_v41 = vpop.f32.mrf.mxu2 }
  0xb7   :  { %v539_v42 = vadd.f32 %v532_v41, %v447_v40  ;;  %v448_v43 = vpop.f32.mrf.mxu1 }
  0xb8   :  { %v449_v49 = vadd.f32 %v448_v43, %v381_v45 }
  0xb9   :  { %v560_v48 = vmul.f32 %v539_v42, %v539_v42  ;;  %v550_v52 = vadd.f32 %v549_v47, %v539_v42 }
  0xbb   :  { %v563_v54 = vadd.f32 %v562_v51, %v560_v48 }
  0xbe   :  { %v534_v50 = vpop.f32.mrf.mxu2 }
  0xbf   :  { %v540_v53 = vadd.f32 %v534_v50, %v449_v49 }
  0xc1   :  { %v779_v55 = vpack.c.bf16 %v540_v53, %v539_v42  ;;  %v551_v56 = vadd.f32 %v550_v52, %v540_v53  ;;  %v561_v57 = vmul.f32 %v540_v53, %v540_v53 }
  0xc3   :  { %786 = vst [vmem:[%s1005_s6 + $0x8] sm:$0xff] %v779_v55   ;;  %v552_v58 = vrot.slane %v551_v56, 4  ;;  %v564_v59 = vadd.f32 %v563_v54, %v561_v57 }
  0xc5   :  { %v553_v60 = vadd.f32 %v552_v58, %v551_v56  ;;  %v565_v61 = vrot.slane %v564_v59, 4 }
  0xc7   :  { %v554_v62 = vrot.slane %v553_v60, 2  ;;  %v566_v63 = vadd.f32 %v565_v61, %v564_v59 }
  0xc9   :  { %v555_v0 = vadd.f32 %v554_v62, %v553_v60  ;;  %v567_v1 = vrot.slane %v566_v63, 2 }
  0xcb   :  { %v556_v2 = vrot.slane %v555_v0, 1  ;;  %v568_v3 = vadd.f32 %v567_v1, %v566_v63 }
  0xcd   :  { %v569_v4 = vrot.slane %v568_v3, 1  ;;  %v557_v5 = vadd.f32 %v556_v2, %v555_v0 }
  0xcf   :  { %v570_v6 = vadd.f32 %v569_v4, %v568_v3 }
  0xd1   :  { %v572_v7 = vsel %vm571_vm13, %v557_v5, %v570_v6 }
  0xd2   :  { %573 = vst [vmem:[%s1006_s7] sm:$0x3] %v572_v7 }

// kernel: unet_down.5
= control target key start
LH: loop header
LB: loop body
LE: loop exit
PB: predicated region body
PF: predicated region fallthrough
CT: control target
= control target key end

     0   :  { %s105_s0 = inlined_call_operand.vmem [shape: f32[1,128], index: 0, kind: input, shape index: {}]   ;;  %s106_s1 = inlined_call_operand.vmem [shape: f32[1,128], index: 1, kind: input, shape index: {}]   ;;  %s107_s2 = inlined_call_operand.vmem [shape: bf16[32,128], index: 2, kind: input, shape index: {}]   ;;  %s108_s3 = inlined_call_operand.vmem [shape: f32[32,128], index: 3, kind: output, shape index: {}]  }
   0x1   :  { %v51_v0 = vld [vmem:[%s107_s2] sm:$0xff]   ;;  %v58_v5 = vld [vmem:[%s107_s2 + $0x8] sm:$0xff]  }
   0x2   :  { %v59_v1 = vld [vmem:[%s105_s0] ss:$0 sm:$0xff]  ;;  %v52_v2 = vunpack.c.l.bf16 %v51_v0  ;;  %v53_v4 = vunpack.c.h.bf16 %v51_v0  ;;  %v56_v6 = vunpack.c.l.bf16 %v58_v5  ;;  %v57_v7 = vunpack.c.h.bf16 %v58_v5 }
   0x3   :  { %v60_v3 = vld [vmem:[%s106_s1] ss:$0 sm:$0xff] }
   0x4   :  { %v26_v8 = vmul.f32 %v59_v1, %v52_v2  ;;  %v27_v9 = vmul.f32 %v59_v1, %v53_v4  ;;  %v28_v10 = vmul.f32 %v59_v1, %v56_v6  ;;  %v29_v11 = vmul.f32 %v59_v1, %v57_v7 }
   0x6   :  { %v34_v12 = vadd.f32 %v60_v3, %v26_v8  ;;  %v35_v13 = vadd.f32 %v60_v3, %v27_v9  ;;  %v36_v14 = vadd.f32 %v60_v3, %v28_v10  ;;  %v37_v15 = vadd.f32 %v60_v3, %v29_v11 }
   0x8   :  { %v38_v16 = vmax.f32 %v34_v12, 0.0  ;;  %v39_v17 = vmax.f32 %v35_v13, 0.0  ;;  %v40_v18 = vmax.f32 %v36_v14, 0.0  ;;  %v41_v19 = vmax.f32 %v37_v15, 0.0 }
   0xa   :  { %42 = vst [vmem:[%s108_s3] sm:$0xff] %v38_v16 }
   0xb   :  { %43 = vst [vmem:[%s108_s3 + $0x8] sm:$0xff] %v39_v17 }
   0xc   :  { %44 = vst [vmem:[%s108_s3 + $0x10] sm:$0xff] %v40_v18 }
   0xd   :  { %45 = vst [vmem:[%s108_s3 + $0x18] sm:$0xff] %v41_v19 }

</bundles_post_ra>
